<compile_context>
chip_gen: v6e
topology: v6e:2x2x1
jax: 0.10.0
libtpu: 0.0.40
codegen_flags: <defaults>
</compile_context>

<pallas_src>
import jax
import jax.numpy as jnp
from jax.experimental import pallas as pl
from jax.experimental.pallas import tpu as pltpu

LANE = 128
SUBLANE = 8


def _round_up(n: int, m: int) -> int:
    return ((n + m - 1) // m) * m


def _cdiv(a: int, b: int) -> int:
    return (a + b - 1) // b


def _embedding_net_kernel(x_ref, w1_ref, b1_ref, w2_ref, b2_ref, o_ref):
    # Fused:  ReLU( ReLU(x @ W1 + b1) @ W2 + b2 )  entirely in VMEM.
    x = x_ref[...].astype(w1_ref.dtype)            # cast to matmul dtype in VMEM (no HBM cost)
    h = jnp.dot(x, w1_ref[...], preferred_element_type=jnp.float32)
    h = jnp.maximum(h + b1_ref[...], 0.0)          # bias + ReLU in f32 (v5e VPU has no bf16)
    h = h.astype(w2_ref.dtype)                     # back to matmul dtype for the 2nd MXU pass
    y = jnp.dot(h, w2_ref[...], preferred_element_type=jnp.float32)
    o_ref[...] = jnp.maximum(y + b2_ref[...], 0.0)  # o_ref is f32; narrow (true d_out) store


def prepare_params(w1, b1, w2, b2, matmul_dtype=jnp.bfloat16):
    """Pad/cast the weights ONCE (hoisted out of the per-call path).

    Only the hidden dim is lane-padded: the intermediate activation never touches HBM, so
    padding it is free, while x (contracting dim of W1) and the output (W2 columns) keep
    their true widths so neither stream is inflated in HBM.
    Zero padding is exact: padded hidden cols get zero bias -> ReLU(0)=0, and the matching
    W2 rows are zero.
    """
    d_in, h_dim = w1.shape
    h_dim2, d_out = w2.shape
    assert h_dim == h_dim2, "weight shape mismatch"
    cdt = jnp.dtype(matmul_dtype)
    h_p = _round_up(h_dim, LANE)
    w1p = jnp.zeros((d_in, h_p), cdt).at[:, :h_dim].set(w1.astype(cdt))
    b1p = jnp.zeros((1, h_p), jnp.float32).at[0, :h_dim].set(b1.astype(jnp.float32))
    w2p = jnp.zeros((h_p, d_out), cdt).at[:h_dim, :].set(w2.astype(cdt))
    b2p = jnp.asarray(b2, jnp.float32).reshape(1, d_out)
    return w1p, b1p, w2p, b2p


def basic_embedding_net_prepared(x, params, *, tb_max=1024, min_grid_steps=2):
    """Forward pass with pre-padded/cast params (see prepare_params)."""
    w1p, b1p, w2p, b2p = params
    B, d_in = x.shape
    d_in_w, h_p = w1p.shape
    h_p2, d_out = w2p.shape
    assert d_in == d_in_w and h_p == h_p2, "param shape mismatch"

    # Balanced batch tiling: even tiles (no near-2x row padding), and >= 2 grid steps when
    # B allows it so the "parallel" axis can shard across both v7x TensorCores.
    n_steps = max(_cdiv(B, tb_max), 1)
    if B > SUBLANE:
        n_steps = max(n_steps, min_grid_steps)
    tb = max(_round_up(_cdiv(B, n_steps), SUBLANE), SUBLANE)
    b_p = _round_up(B, tb)
    grid = (b_p // tb,)

    # Only row-pad x (at most tb-1 extra rows); the feature dim stays at its true width.
    xp = x if b_p == B else jnp.zeros((b_p, d_in), x.dtype).at[:B, :].set(x)

    # VMEM budget: double-buffered x/out tiles + (double-buffered) resident weights/biases
    # + f32 intermediate, 1.5x headroom, capped at 48 MiB (v7x physical VMEM is 64 MiB).
    w_isz = w1p.dtype.itemsize
    vmem_needed = (2 * tb * d_in * x.dtype.itemsize
                   + 2 * tb * d_out * 4
                   + 2 * (d_in * h_p + h_p * d_out) * w_isz
                   + 2 * (h_p + d_out) * 4
                   + tb * h_p * 4)
    vmem_limit = min(max(int(vmem_needed * 1.5) + (4 << 20), 16 << 20), 48 << 20)

    out = pl.pallas_call(
        _embedding_net_kernel,
        out_shape=jax.ShapeDtypeStruct((b_p, d_out), jnp.float32),
        grid=grid,
        in_specs=[
            pl.BlockSpec((tb, d_in), lambda i: (i, 0)),      # x: batch-tiled, true last dim
            pl.BlockSpec((d_in, h_p), lambda i: (0, 0)),     # W1: VMEM-resident
            pl.BlockSpec((1, h_p), lambda i: (0, 0)),        # b1: VMEM-resident
            pl.BlockSpec((h_p, d_out), lambda i: (0, 0)),    # W2: VMEM-resident
            pl.BlockSpec((1, d_out), lambda i: (0, 0)),      # b2: VMEM-resident
        ],
        out_specs=pl.BlockSpec((tb, d_out), lambda i: (i, 0)),  # narrow (true d_out) output
        compiler_params=pltpu.CompilerParams(
            dimension_semantics=("parallel",),   # megacore-shardable batch axis
            vmem_limit_bytes=vmem_limit,
        ),
    )(xp, w1p, b1p, w2p, b2p)

    return out if b_p == B else out[:B]


def basic_embedding_net(x, w1, b1, w2, b2, *, matmul_dtype=jnp.bfloat16, tb_max=1024):
    """Convenience wrapper: pads/casts params then runs the fused kernel.

    x: (B, D_in) f32; w1: (D_in, H); b1: (H,); w2: (H, D_out); b2: (D_out,)
    returns (B, D_out) f32.  In serving loops call prepare_params() once instead.
    """
    params = prepare_params(w1, b1, w2, b2, matmul_dtype)
    return basic_embedding_net_prepared(x, params, tb_max=tb_max)


def init_params(key, input_dim=3, hidden_dim=3, output_dim=3):
    """Deterministic synthetic init mirroring nn.Linear parameter shapes (stored (in, out))."""
    k1, k2, k3, k4 = jax.random.split(key, 4)
    s1 = 1.0 / jnp.sqrt(input_dim)
    s2 = 1.0 / jnp.sqrt(hidden_dim)
    w1 = jax.random.uniform(k1, (input_dim, hidden_dim), jnp.float32, -s1, s1)
    b1 = jax.random.uniform(k2, (hidden_dim,), jnp.float32, -s1, s1)
    w2 = jax.random.uniform(k3, (hidden_dim, output_dim), jnp.float32, -s2, s2)
    b2 = jax.random.uniform(k4, (output_dim,), jnp.float32, -s2, s2)
    return w1, b1, w2, b2


def _reference(x, w1, b1, w2, b2):
    return jnp.maximum(jnp.maximum(x @ w1 + b1, 0.0) @ w2 + b2, 0.0)


if __name__ == "__main__":
    key = jax.random.PRNGKey(0)
    kx, kp, kx2, kp2 = jax.random.split(key, 4)

    # 1) Native module size (B=8, dims=3): f32 operands, tight tolerance.
    input_dim = hidden_dim = output_dim = 3
    batch = 8
    x = jax.random.normal(kx, (batch, input_dim), jnp.float32)
    w1, b1, w2, b2 = init_params(kp, input_dim, hidden_dim, output_dim)

    out = jax.block_until_ready(
        basic_embedding_net(x, w1, b1, w2, b2, matmul_dtype=jnp.float32))
    ref = _reference(x, w1, b1, w2, b2)
    assert out.shape == (batch, output_dim)
    assert jnp.allclose(out, ref, atol=1e-5, rtol=1e-5)

    # 2) Larger case: balanced batch tiling (>=2 grid steps), unpadded x/out streams,
    #    hidden-dim padding, hoisted param prep, and the bf16 MXU default path.
    B2, d_in2, h2, d_out2 = 1000, 7, 33, 5
    x2 = jax.random.normal(kx2, (B2, d_in2), jnp.float32)
    w1b, b1b, w2b, b2b = init_params(kp2, d_in2, h2, d_out2)
    ref2 = _reference(x2, w1b, b1b, w2b, b2b)

    params_f32 = prepare_params(w1b, b1b, w2b, b2b, jnp.float32)   # prepared once, reused
    out2_f32 = jax.block_until_ready(basic_embedding_net_prepared(x2, params_f32))
    assert out2_f32.shape == (B2, d_out2)
    assert jnp.allclose(out2_f32, ref2, atol=1e-4, rtol=1e-4)

    params_bf16 = prepare_params(w1b, b1b, w2b, b2b, jnp.bfloat16)  # default / v6e-v7x path
    out2_bf16 = jax.block_until_ready(basic_embedding_net_prepared(x2, params_bf16))
    assert out2_bf16.shape == (B2, d_out2)
    assert jnp.allclose(out2_bf16, ref2, atol=5e-2, rtol=5e-2)

    print("KERNEL_OK")
</pallas_src>

<mosaic_0001>
module attributes {stable_mosaic.version = 11 : i64} {
  func.func @_embedding_net_kernel(%arg0: i32, %arg1: memref<8x3xf32, #tpu.memory_space<vmem>>, %arg2: memref<3x128xf32, #tpu.memory_space<vmem>>, %arg3: memref<1x128xf32, #tpu.memory_space<vmem>>, %arg4: memref<128x3xf32, #tpu.memory_space<vmem>>, %arg5: memref<1x3xf32, #tpu.memory_space<vmem>>, %arg6: memref<8x3xf32, #tpu.memory_space<vmem>>) attributes {dimension_semantics = [#tpu.dimension_semantics<parallel>], iteration_bounds = array<i64: 1>, scalar_prefetch = 0 : i64, scratch_operands = 0 : i64, tpu.core_type = #tpu.core_type<tc>, window_params = [{transform_indices = @transform_0, window_bounds = array<i64: 8, 3>}, {pipeline_mode = #tpu.pipeline_mode<synchronous>, transform_indices = @transform_1, window_bounds = array<i64: 3, 128>}, {pipeline_mode = #tpu.pipeline_mode<synchronous>, transform_indices = @transform_2, window_bounds = array<i64: 1, 128>}, {pipeline_mode = #tpu.pipeline_mode<synchronous>, transform_indices = @transform_3, window_bounds = array<i64: 128, 3>}, {pipeline_mode = #tpu.pipeline_mode<synchronous>, transform_indices = @transform_4, window_bounds = array<i64: 1, 3>}, {transform_indices = @transform_5, window_bounds = array<i64: 8, 3>}]} {
    %c0 = arith.constant 0 : index
    %c0_0 = arith.constant 0 : index
    %0 = vector.load %arg1[%c0, %c0_0] : memref<8x3xf32, #tpu.memory_space<vmem>>, vector<8x3xf32>
    %c0_1 = arith.constant 0 : index
    %c0_2 = arith.constant 0 : index
    %1 = vector.load %arg2[%c0_1, %c0_2] : memref<3x128xf32, #tpu.memory_space<vmem>>, vector<3x128xf32>
    %cst = arith.constant dense<0.000000e+00> : vector<8x128xf32>
    %2 = tpu.matmul %0, %1, %cst {dimension_numbers = #tpu.dot_dimension_numbers<[1], [0], [0], [1], [0, 0, 1, 1], [], []>} : vector<8x3xf32>, vector<3x128xf32>, vector<8x128xf32> -> vector<8x128xf32>
    %c0_3 = arith.constant 0 : index
    %c0_4 = arith.constant 0 : index
    %3 = vector.load %arg3[%c0_3, %c0_4] : memref<1x128xf32, #tpu.memory_space<vmem>>, vector<1x128xf32>
    %4 = vector.broadcast %3 : vector<1x128xf32> to vector<8x128xf32>
    %5 = arith.addf %2, %4 : vector<8x128xf32>
    %cst_5 = arith.constant 0.000000e+00 : f32
    %6 = vector.broadcast %cst_5 : f32 to vector<8x128xf32>
    %7 = arith.maximumf %5, %6 : vector<8x128xf32>
    %c0_6 = arith.constant 0 : index
    %c0_7 = arith.constant 0 : index
    %8 = vector.load %arg4[%c0_6, %c0_7] : memref<128x3xf32, #tpu.memory_space<vmem>>, vector<128x3xf32>
    %cst_8 = arith.constant dense<0.000000e+00> : vector<8x3xf32>
    %9 = tpu.matmul %7, %8, %cst_8 {dimension_numbers = #tpu.dot_dimension_numbers<[1], [0], [0], [1], [0, 0, 1, 1], [], []>} : vector<8x128xf32>, vector<128x3xf32>, vector<8x3xf32> -> vector<8x3xf32>
    %c0_9 = arith.constant 0 : index
    %c0_10 = arith.constant 0 : index
    %10 = vector.load %arg5[%c0_9, %c0_10] : memref<1x3xf32, #tpu.memory_space<vmem>>, vector<1x3xf32>
    %11 = vector.broadcast %10 : vector<1x3xf32> to vector<8x3xf32>
    %12 = arith.addf %9, %11 : vector<8x3xf32>
    %cst_11 = arith.constant 0.000000e+00 : f32
    %13 = vector.broadcast %cst_11 : f32 to vector<8x3xf32>
    %14 = arith.maximumf %12, %13 : vector<8x3xf32>
    %c0_12 = arith.constant 0 : index
    %c0_13 = arith.constant 0 : index
    %15 = vector.load %arg6[%c0_12, %c0_13] : memref<8x3xf32, #tpu.memory_space<vmem>>, vector<8x3xf32>
    tpu.vector_store %arg6[%c0_12, %c0_13], %14 {strides = array<i32>} : memref<8x3xf32, #tpu.memory_space<vmem>>, vector<8x3xf32>,
    return
  }
  func.func @transform_0(%arg0: i32) -> (i32, i32) {
    %c0_i32 = arith.constant 0 : i32
    %c0_i32_0 = arith.constant 0 : i32
    return %arg0, %c0_i32 : i32, i32
  }
  func.func @transform_1(%arg0: i32) -> (i32, i32) {
    %c0_i32 = arith.constant 0 : i32
    %c0_i32_0 = arith.constant 0 : i32
    %c0_i32_1 = arith.constant 0 : i32
    return %c0_i32, %c0_i32_0 : i32, i32
  }
  func.func @transform_2(%arg0: i32) -> (i32, i32) {
    %c0_i32 = arith.constant 0 : i32
    %c0_i32_0 = arith.constant 0 : i32
    %c0_i32_1 = arith.constant 0 : i32
    return %c0_i32, %c0_i32_0 : i32, i32
  }
  func.func @transform_3(%arg0: i32) -> (i32, i32) {
    %c0_i32 = arith.constant 0 : i32
    %c0_i32_0 = arith.constant 0 : i32
    %c0_i32_1 = arith.constant 0 : i32
    return %c0_i32, %c0_i32_0 : i32, i32
  }
  func.func @transform_4(%arg0: i32) -> (i32, i32) {
    %c0_i32 = arith.constant 0 : i32
    %c0_i32_0 = arith.constant 0 : i32
    %c0_i32_1 = arith.constant 0 : i32
    return %c0_i32, %c0_i32_0 : i32, i32
  }
  func.func @transform_5(%arg0: i32) -> (i32, i32) {
    %c0_i32 = arith.constant 0 : i32
    %c0_i32_0 = arith.constant 0 : i32
    return %arg0, %c0_i32 : i32, i32
  }
}

</mosaic_0001>

<bundles_post_ra>
// kernel: tpu_custom_call.1
= control target key start
LH: loop header
LB: loop body
LE: loop exit
PB: predicated region body
PF: predicated region fallthrough
CT: control target
= control target key end

     0   :  { %vm33_vm0 = vcmask 1042432   ;;  %vm29_vm1 = vcmask 23552   ;;  %v272_v0 = vmov 0.0   ;;  %vm273_vm2 = vmmov 0   ;;  %s369_s1 = inlined_call_operand.vmem [shape: f32[3,128], index: 1, kind: input, shape index: {}]   ;;  %s370_s0 = inlined_call_operand.vmem [shape: f32[8,3], index: 0, kind: input, shape index: {}]   ;;  %s371_s3 = inlined_call_operand.vmem [shape: f32[128,3], index: 3, kind: input, shape index: {}]   ;;  %s372_s2 = inlined_call_operand.vmem [shape: f32[1,128], index: 2, kind: input, shape index: {}]   ;;  %s373_s4 = inlined_call_operand.vmem [shape: f32[1,3], index: 4, kind: input, shape index: {}]   ;;  %s374_s5 = inlined_call_operand.vmem [shape: f32[8,3], index: 5, kind: output, shape index: {}]  }
   0x1   :  { %230 = vmatprep.subr.mxu0 %v272_v0  ;;  %v21_v1 = vld [vmem:[%s369_s1] sm:$0x7]  ;;  %232 = vmatprep.mubr.msk.f32.mxu0 %vm273_vm2, %v272_v0  ;;  %v123_v3 = vld [vmem:[%s371_s3 + $0x78] sm:$0xff]  ;;  %v122_v4 = vld [vmem:[%s371_s3 + $0x70] sm:$0xff] }
   0x2   :  { %v20_v2 = vld [vmem:[%s370_s0] sm:$0xff]  ;;  %231 = vmatpush3.msk.msra.mxu0 %vm33_vm0, %v21_v1  ;;  %235 = vmatprep.subr.mxu1 %v272_v0  ;;  %v121_v5 = vld [vmem:[%s371_s3 + $0x68] sm:$0xff]  ;;  %v119_v7 = vld [vmem:[%s371_s3 + $0x58] sm:$0xff] }
   0x3   :  { %233 = vmatmul.mubr.msk.f32.vlgmr.msra.gmra.mxu0 %vm29_vm1, %v20_v2  ;;  %236 = vmatpush3.msra.mxu1 %v123_v3  ;;  %v120_v6 = vld [vmem:[%s371_s3 + $0x60] sm:$0xff]  ;;  %v118_v8 = vld [vmem:[%s371_s3 + $0x50] sm:$0xff]  ;;  %v117_v9 = vld [vmem:[%s371_s3 + $0x48] sm:$0xff] }
   0x4   :  { %237 = vmatprep.subr.mxu1 %v272_v0  ;;  %267 = vmatprep.mubr.msk.f32.mxu1 %vm273_vm2, %v272_v0  ;;  %v116_v10 = vld [vmem:[%s371_s3 + $0x40] sm:$0xff]  ;;  %v115_v11 = vld [vmem:[%s371_s3 + $0x38] sm:$0xff]  ;;  %v114_v12 = vld [vmem:[%s371_s3 + $0x30] sm:$0xff] }
   0x5   :  { %238 = vmatpush3.msra.mxu1 %v122_v4  ;;  %v113_v13 = vld [vmem:[%s371_s3 + $0x28] sm:$0xff]  ;;  %v112_v14 = vld [vmem:[%s371_s3 + $0x20] sm:$0xff]  ;;  %v111_v15 = vld [vmem:[%s371_s3 + $0x18] sm:$0xff] }
   0x6   :  { %239 = vmatprep.subr.mxu1 %v272_v0  ;;  %v110_v16 = vld [vmem:[%s371_s3 + $0x10] sm:$0xff]  ;;  %v109_v17 = vld [vmem:[%s371_s3 + $0x8] sm:$0xff]  ;;  %v108_v18 = vld [vmem:[%s371_s3] sm:$0xff] }
   0x7   :  { %240 = vmatpush3.msra.mxu1 %v121_v5  ;;  %v207_v19 = vld [vmem:[%s372_s2] ss:$0 sm:$0xff] }
   0x8   :  { %241 = vmatprep.subr.mxu1 %v272_v0  ;;  %v210_v24 = vld [vmem:[%s373_s4] ss:$0 sm:$0xff] }
   0x9   :  { %242 = vmatpush3.msra.mxu1 %v120_v6 }
   0xa   :  { %243 = vmatprep.subr.mxu1 %v272_v0 }
   0xb   :  { %244 = vmatpush3.msra.mxu1 %v119_v7 }
   0xc   :  { %245 = vmatprep.subr.mxu1 %v272_v0 }
   0xd   :  { %246 = vmatpush3.msra.mxu1 %v118_v8 }
   0xe   :  { %247 = vmatprep.subr.mxu1 %v272_v0 }
   0xf   :  { %248 = vmatpush3.msra.mxu1 %v117_v9 }
  0x10   :  { %249 = vmatprep.subr.mxu1 %v272_v0 }
  0x11   :  { %250 = vmatpush3.msra.mxu1 %v116_v10 }
  0x12   :  { %251 = vmatprep.subr.mxu1 %v272_v0 }
  0x13   :  { %252 = vmatpush3.msra.mxu1 %v115_v11 }
  0x14   :  { %253 = vmatprep.subr.mxu1 %v272_v0 }
  0x15   :  { %254 = vmatpush3.msra.mxu1 %v114_v12 }
  0x16   :  { %255 = vmatprep.subr.mxu1 %v272_v0 }
  0x17   :  { %256 = vmatpush3.msra.mxu1 %v113_v13 }
  0x18   :  { %257 = vmatprep.subr.mxu1 %v272_v0 }
  0x19   :  { %258 = vmatpush3.msra.mxu1 %v112_v14 }
  0x1a   :  { %259 = vmatprep.subr.mxu1 %v272_v0 }
  0x1b   :  { %260 = vmatpush3.msra.mxu1 %v111_v15 }
  0x1c   :  { %261 = vmatprep.subr.mxu1 %v272_v0 }
  0x1d   :  { %262 = vmatpush3.msra.mxu1 %v110_v16 }
  0x1e   :  { %263 = vmatprep.subr.mxu1 %v272_v0 }
  0x1f   :  { %264 = vmatpush3.msra.mxu1 %v109_v17 }
  0x20   :  { %265 = vmatprep.subr.mxu1 %v272_v0 }
  0x21   :  { %266 = vmatpush3.msra.mxu1 %v108_v18 }
  0xc3   :  { %v103_v20 = vpop.f32.mrf.mxu0 }
  0xc4   :  { %v104_v21 = vadd.f32 %v207_v19, %v103_v20 }
  0xc5   :  { %v234_v22 = vpop.f32.mrf.mxu0 }
  0xc6   :  { %v107_v23 = vmax.f32 %v104_v21, 0.0 }
  0xc8   :  { %268 = vmatmul.mubr.f32.vlgmr.msra.gmra.mxu1 %v107_v23 }
 0x188   :  { %v197_v25 = vpop.f32.mrf.mxu1 }
 0x189   :  { %v198_v26 = vadd.f32 %v210_v24, %v197_v25 }
 0x18a   :  { %v269_v27 = vpop.f32.mrf.mxu1 }
 0x18b   :  { %v201_v28 = vmax.f32 %v198_v26, 0.0 }
 0x18d   :  { %202 = vst.msk [vmem:[%s374_s5] sm:$0xff] %vm29_vm1, %v201_v28 }

</bundles_post_ra>
